<compile_context>
chip_gen: v7x
topology: tpu7x:2x2x1
jax: 0.10.0
libtpu: 0.0.40
codegen_flags: <defaults>
</compile_context>

<pallas_src>
import functools

import numpy as np
import jax
import jax.numpy as jnp
from jax.experimental import pallas as pl
from jax.experimental.pallas import tpu as pltpu

EPS = 1e-8
NEG_SLOPE = 0.2
RGB_PAD = 128          # lane-dense padded RGB channel count (3 -> 128)


# ---------------------------------------------------------------------------
# Fused StyleBlock (+ optional ToRGB epilogue) kernel
# ---------------------------------------------------------------------------

def _style_block_kernel(x_ref, s_ref, d_ref, w_ref, noise_ref, nscale_ref, bias_ref,
                        *rest, wp, m_rows, has_rgb):
    """One (sample, row-tile) of a StyleGAN2 StyleBlock.

    x_ref      (1, S, Cin)      bf16  haloed activation slab (row-flattened, padded width)
    s_ref      (1, 1, Cin)      f32   per-sample style modulation (hoisted projection)
    d_ref      (1, 1, Coutp)    f32   per-sample demodulation scale (hoisted)
    w_ref      (9, Cin, Coutp)  bf16  shared conv taps (resident across the grid)
    noise_ref  (1, M, 1)        bf16  per-pixel noise for this tile
    nscale_ref (1,)             f32   scale_noise scalar (SMEM)
    bias_ref   (1, Coutp)       f32
    [has_rgb]  srgb_ref (1,1,Coutp) f32, wrgb_ref (Coutp,128) bf16, brgb_ref (1,128) f32
    outputs    xout_ref (1, M, Coutp) bf16  [, rgb_ref (1, M, 128) bf16]
    scratch    xm_ref   (S, Cin) bf16
    """
    if has_rgb:
        srgb_ref, wrgb_ref, brgb_ref, xout_ref, rgb_ref, xm_ref = rest
    else:
        xout_ref, xm_ref = rest

    coutp = w_ref.shape[-1]

    # StyleGAN2 "fused" modulation: scale the activations once, keep weights shared.
    xm_ref[...] = (x_ref[0] * s_ref[0]).astype(jnp.bfloat16)

    # 3x3 conv = 9 MXU matmuls; because the slab is row-flattened at padded width,
    # each tap's LHS is a contiguous row-offset slice (no im2col, no reshapes).
    acc = jnp.zeros((m_rows, coutp), jnp.float32)
    for ky in range(3):
        for kx in range(3):
            off = ky * wp + kx
            acc = acc + jnp.dot(xm_ref[pl.ds(off, m_rows), :], w_ref[ky * 3 + kx],
                                preferred_element_type=jnp.float32)

    acc = acc * d_ref[0]                                              # demodulation
    acc = acc + nscale_ref[0] * noise_ref[0].astype(jnp.float32)      # + scale_noise * noise
    acc = acc + bias_ref[...]
    x_act = jnp.where(acc >= 0.0, acc, NEG_SLOPE * acc)               # LeakyReLU(0.2)
    xout_ref[0] = x_act.astype(xout_ref.dtype)

    if has_rgb:
        # ToRGB epilogue rides the activation tile already on-chip:
        # 1x1 modulated conv (no demod) + bias + LeakyReLU, 128-lane padded output.
        xr = (x_act * srgb_ref[0]).astype(jnp.bfloat16)
        rgb = jnp.dot(xr, wrgb_ref[...], preferred_element_type=jnp.float32) + brgb_ref[...]
        rgb_ref[0] = jnp.where(rgb >= 0.0, rgb, NEG_SLOPE * rgb).astype(rgb_ref.dtype)


# ---------------------------------------------------------------------------
# Wrapper: tiling, haloed slab construction, hoisted style / demod
# ---------------------------------------------------------------------------

def _round_up(n, m):
    return ((n + m - 1) // m) * m


def _pick_tile_rows(h, wp, max_tile_pixels):
    """Largest row-tile TH dividing H such that TH*Wp obeys the (8,128) block rules
    and fits the pixel budget; falls back to the smallest legal tile."""
    divisors = [d for d in range(1, h + 1) if h % d == 0]
    legal = [d for d in divisors if d == h or (d * wp) % 8 == 0]
    fitting = [d for d in legal if d * wp <= max_tile_pixels]
    return max(fitting) if fitting else min(legal)


def styled_conv_block(p, x, w_vec, noise, rgb_p=None, *, max_tile_pixels=2048):
    """Fused StyleBlock forward (modulated 3x3 conv + demod + noise + bias + LeakyReLU),
    optionally fused with the following ToRGB (1x1 modulated conv + bias + LeakyReLU).

    x (B, H, W, Cin), w_vec (B, w_dim), noise (B, 1, H, W)
    Returns x_out (B, H, W, cout) bf16 [, rgb (B, H, W, 3) bf16].
    """
    B, H, W, cin = x.shape
    assert cin == p["cin"]
    cout, coutp = p["cout"], p["cout_pad"]
    wp = W + 2                           # padded width (one halo column per side)

    # ---- hoisted per-sample style projection + demodulation (tiny XLA matmuls) ----
    s = w_vec @ p["style_w_t"] + p["style_b"]                         # (B, cin)
    d = jax.lax.rsqrt((s * s) @ p["wsq_sum"] + EPS)                   # (B, coutp)
    has_rgb = rgb_p is not None
    if has_rgb:
        assert rgb_p["w_rgb"].shape[0] == coutp
        s_rgb = w_vec @ rgb_p["style_w_t"] + rgb_p["style_b"]         # (B, cout)
        s_rgb = jnp.pad(s_rgb, ((0, 0), (0, coutp - cout)))           # zero the padded lanes

    # ---- spatial row tiling ----
    th = _pick_tile_rows(H, wp, max_tile_pixels)
    n_tiles = H // th
    m_rows = th * wp                     # output rows per tile (incl. 2 throw-away columns)
    s_rows = (th + 2) * wp + 2           # haloed slab rows per tile

    # ---- haloed, width-padded, row-flattened activation slabs (bf16) ----
    xpad = jnp.pad(x.astype(jnp.bfloat16), ((0, 0), (1, 2), (1, 1), (0, 0)))  # (B, H+3, wp, cin)
    xflat = xpad.reshape(B, (H + 3) * wp, cin)
    x_tiles = jnp.stack([xflat[:, t * th * wp: t * th * wp + s_rows, :]
                         for t in range(n_tiles)], axis=1)
    x_tiles = x_tiles.reshape(B * n_tiles, s_rows, cin)
    # TODO(synk): replace the stack above with a double-buffered manual DMA of the haloed
    #             slab from the previous layer's output (memory_space=pl.ANY) at scale.

    noise_f = jnp.pad(noise.reshape(B, H, W), ((0, 0), (0, 0), (0, 2)))
    noise_f = noise_f.reshape(B, H * wp, 1).astype(jnp.bfloat16)

    s3 = s.reshape(B, 1, cin).astype(jnp.float32)
    d3 = d.reshape(B, 1, coutp).astype(jnp.float32)

    kernel = functools.partial(_style_block_kernel, wp=wp, m_rows=m_rows, has_rgb=has_rgb)

    in_specs = [
        pl.BlockSpec((1, s_rows, cin), lambda b, t: (b * n_tiles + t, 0, 0)),  # x slab tile
        pl.BlockSpec((1, 1, cin), lambda b, t: (b, 0, 0)),                     # s (modulation)
        pl.BlockSpec((1, 1, coutp), lambda b, t: (b, 0, 0)),                   # d (demod)
        pl.BlockSpec((9, cin, coutp), lambda b, t: (0, 0, 0)),                 # conv taps (resident)
        pl.BlockSpec((1, m_rows, 1), lambda b, t: (b, t, 0)),                  # noise tile
        pl.BlockSpec(memory_space=pltpu.MemorySpace.SMEM),                     # scale_noise
        pl.BlockSpec((1, coutp), lambda b, t: (0, 0)),                         # bias
    ]
    args = [x_tiles, s3, d3, p["w_taps"], noise_f, p["scale_noise"], p["bias"]]
    out_shape = [jax.ShapeDtypeStruct((B, H * wp, coutp), jnp.bfloat16)]
    out_specs = [pl.BlockSpec((1, m_rows, coutp), lambda b, t: (b, t, 0))]
    if has_rgb:
        in_specs += [
            pl.BlockSpec((1, 1, coutp), lambda b, t: (b, 0, 0)),               # s_rgb
            pl.BlockSpec((coutp, RGB_PAD), lambda b, t: (0, 0)),               # rgb weight (resident)
            pl.BlockSpec((1, RGB_PAD), lambda b, t: (0, 0)),                   # rgb bias
        ]
        args += [s_rgb.reshape(B, 1, coutp).astype(jnp.float32),
                 rgb_p["w_rgb"], rgb_p["bias"]]
        out_shape.append(jax.ShapeDtypeStruct((B, H * wp, RGB_PAD), jnp.bfloat16))
        out_specs.append(pl.BlockSpec((1, m_rows, RGB_PAD), lambda b, t: (b, t, 0)))

    outs = pl.pallas_call(
        kernel,
        out_shape=tuple(out_shape) if has_rgb else out_shape[0],
        grid=(B, n_tiles),
        in_specs=in_specs,
        out_specs=tuple(out_specs) if has_rgb else out_specs[0],
        scratch_shapes=[pltpu.VMEM((s_rows, cin), jnp.bfloat16)],
        compiler_params=pltpu.CompilerParams(
            dimension_semantics=("parallel", "parallel"),   # disjoint output tiles
            vmem_limit_bytes=48 * 1024 * 1024,
        ),
    )(*args)

    x_full, rgb_full = (outs if has_rgb else (outs, None))
    # drop the 2 throw-away columns and the lane padding (no-op slices at production widths)
    x_out = x_full.reshape(B, H, wp, coutp)[:, :, :W, :cout]
    if has_rgb:
        rgb = rgb_full.reshape(B, H, wp, RGB_PAD)[:, :, :W, :3]
        return x_out, rgb
    return x_out


# ---------------------------------------------------------------------------
# Plain-JAX glue: bilinear x2 upsample (F.interpolate, align_corners=False)
# ---------------------------------------------------------------------------

def _up2_src(n):
    out = np.arange(2 * n, dtype=np.float64)
    src = np.maximum((out + 0.5) / 2.0 - 0.5, 0.0)
    i0 = np.minimum(np.floor(src).astype(np.int32), n - 1)
    i1 = np.minimum(i0 + 1, n - 1)
    lam = (src - i0).astype(np.float32)
    return i0, i1, lam


def upsample2_bilinear_nhwc(x):
    B, H, W, C = x.shape
    i0h, i1h, lh = _up2_src(H)
    i0w, i1w, lw = _up2_src(W)
    lh = jnp.asarray(lh, x.dtype)[None, :, None, None]
    lw = jnp.asarray(lw, x.dtype)[None, None, :, None]
    one = jnp.asarray(1.0, x.dtype)
    xh = x[:, i0h, :, :] * (one - lh) + x[:, i1h, :, :] * lh
    return xh[:, :, i0w, :] * (one - lw) + xh[:, :, i1w, :] * lw


# ---------------------------------------------------------------------------
# Parameters (deterministic, mirroring the module's __init__ shapes)
# ---------------------------------------------------------------------------

def init_generator_params(key, log_resolution, w_dim, clip_dim,
                          n_features=32, max_features=512):
    features = [min(max_features, n_features * 2 ** i)
                for i in range(log_resolution - 2, -1, -1)]
    n_blocks = len(features)
    keys = iter(jax.random.split(key, 128))

    def eq_linear(din, dout, bias_init):
        w = jax.random.normal(next(keys), (dout, din), jnp.float32) * (1.0 / np.sqrt(din))
        return w.T, jnp.full((1, dout), bias_init, jnp.float32)

    def style_block(cin, cout):
        k = 3
        coutp = _round_up(cout, 128)                                  # lane-dense output
        w = jax.random.normal(next(keys), (cout, cin, k, k), jnp.float32)
        w = w * (1.0 / np.sqrt(cin * k * k))                          # EqualizedWeight
        w_taps = jnp.transpose(w, (2, 3, 1, 0)).reshape(k * k, cin, cout)
        w_taps = jnp.pad(w_taps, ((0, 0), (0, 0), (0, coutp - cout)))
        wst_t, bst = eq_linear(w_dim, cin, 1.0)
        return {
            "style_w_t": wst_t, "style_b": bst,                       # (w_dim, cin), (1, cin)
            "w_taps": w_taps.astype(jnp.bfloat16),                    # (9, cin, coutp)
            "wsq_sum": jnp.sum(w_taps * w_taps, axis=0),              # (cin, coutp) for demod
            "scale_noise": jnp.zeros((1,), jnp.float32),
            "bias": jnp.zeros((1, coutp), jnp.float32),
            "cin": cin, "cout": cout, "cout_pad": coutp,
        }

    def to_rgb(cin):
        cinp = _round_up(cin, 128)
        w = jax.random.normal(next(keys), (3, cin), jnp.float32) * (1.0 / np.sqrt(cin))
        w_mat = jnp.pad(w.T, ((0, cinp - cin), (0, RGB_PAD - 3)))     # (cinp, 128)
        wst_t, bst = eq_linear(w_dim, cin, 1.0)
        return {
            "style_w_t": wst_t, "style_b": bst,
            "w_rgb": w_mat.astype(jnp.bfloat16),
            "bias": jnp.zeros((1, RGB_PAD), jnp.float32),
            "cin": cin,
        }

    return {
        "features": features,
        "n_blocks": n_blocks,
        # stored NHWC so activations keep channels on the lane dim end-to-end
        "initial_constant": jnp.transpose(
            jax.random.normal(next(keys), (1, features[0], 4, 4), jnp.float32),
            (0, 2, 3, 1)),
        "style_block": style_block(features[0], features[0]),
        "to_rgb": to_rgb(features[0]),
        "emb_w_t": (jax.random.normal(next(keys), (w_dim, clip_dim), jnp.float32)
                    * (1.0 / np.sqrt(clip_dim))).T,
        "emb_b": jnp.zeros((1, w_dim), jnp.float32),
        "blocks": [
            {"sb1": style_block(features[i - 1], features[i]),
             "sb2": style_block(features[i], features[i]),
             "to_rgb": to_rgb(features[i])}
            for i in range(1, n_blocks)
        ],
    }


# ---------------------------------------------------------------------------
# Forward pass (mirrors Generator.forward)
# ---------------------------------------------------------------------------

def generator_forward(params, w, input_noise, clip_embedding, *, max_tile_pixels=2048):
    batch = w.shape[1]
    # CLIP adaptor matmul left to XLA (launch + DMA would cost more than the compute).
    adapted = clip_embedding @ params["emb_w_t"] + params["emb_b"]
    w = w + adapted[None, :, :]

    x = jnp.broadcast_to(params["initial_constant"],
                         (batch,) + params["initial_constant"].shape[1:])   # (B, 4, 4, f0)

    x, rgb = styled_conv_block(params["style_block"], x, w[0], input_noise[0][1],
                               rgb_p=params["to_rgb"], max_tile_pixels=max_tile_pixels)
    rgb = rgb.astype(jnp.float32)

    for i in range(1, params["n_blocks"]):
        bp = params["blocks"][i - 1]
        x = upsample2_bilinear_nhwc(x)                                      # bf16 throughout
        x = styled_conv_block(bp["sb1"], x, w[i], input_noise[i][0],
                              max_tile_pixels=max_tile_pixels)
        x, rgb_new = styled_conv_block(bp["sb2"], x, w[i], input_noise[i][1],
                                       rgb_p=bp["to_rgb"], max_tile_pixels=max_tile_pixels)
        rgb = upsample2_bilinear_nhwc(rgb) + rgb_new.astype(jnp.float32)

    # tanh + the single NHWC->NCHW transpose stay in XLA (elementwise / layout glue).
    return jnp.transpose(jnp.tanh(rgb), (0, 3, 1, 2))


# ---------------------------------------------------------------------------
# Pure-JAX reference + self check (same bf16 quantization points as the kernel)
# ---------------------------------------------------------------------------

def _styled_conv_ref(p, x, w_vec, noise, rgb_p=None):
    B, H, W, cin = x.shape
    cout = p["cout"]
    s = w_vec @ p["style_w_t"] + p["style_b"]
    d = jax.lax.rsqrt((s * s) @ p["wsq_sum"] + EPS)
    xb = x.astype(jnp.bfloat16).astype(jnp.float32)
    xm = (xb * s[:, None, None, :]).astype(jnp.bfloat16).astype(jnp.float32)
    xp = jnp.pad(xm, ((0, 0), (1, 1), (1, 1), (0, 0)))
    w_taps = p["w_taps"].astype(jnp.float32)
    acc = jnp.zeros((B, H, W, w_taps.shape[-1]), jnp.float32)
    for ky in range(3):
        for kx in range(3):
            acc = acc + jnp.einsum("bhwc,co->bhwo",
                                   xp[:, ky:ky + H, kx:kx + W, :], w_taps[ky * 3 + kx])
    acc = acc * d[:, None, None, :]
    acc = acc + p["scale_noise"][0] * noise.reshape(B, H, W, 1)
    acc = acc + p["bias"][0]
    x_act = jnp.where(acc >= 0.0, acc, NEG_SLOPE * acc)
    x_out = x_act[..., :cout]
    if rgb_p is None:
        return x_out
    s_rgb = w_vec @ rgb_p["style_w_t"] + rgb_p["style_b"]
    xr = (x_out * s_rgb[:, None, None, :]).astype(jnp.bfloat16).astype(jnp.float32)
    w_rgb = rgb_p["w_rgb"].astype(jnp.float32)[:cout, :3]
    rgb = jnp.einsum("bhwc,co->bhwo", xr, w_rgb) + rgb_p["bias"][0, :3]
    return x_out, jnp.where(rgb >= 0.0, rgb, NEG_SLOPE * rgb)


def _self_check(params, key, max_tile_pixels):
    w_dim = params["style_block"]["style_w_t"].shape[0]
    B = 2
    keys = jax.random.split(key, 6)

    def check(p, rgb_p, res, kset):
        pc = dict(p)
        pc["scale_noise"] = jnp.full((1,), 0.37, jnp.float32)   # exercise the noise path
        x = jax.random.normal(kset[0], (B, res, res, p["cin"]), jnp.float32)
        wv = jax.random.normal(kset[1], (B, w_dim), jnp.float32)
        nz = jax.random.normal(kset[2], (B, 1, res, res), jnp.float32)
        got = styled_conv_block(pc, x, wv, nz, rgb_p=rgb_p, max_tile_pixels=max_tile_pixels)
        ref = _styled_conv_ref(pc, x, wv, nz, rgb_p=rgb_p)
        got = got if isinstance(got, tuple) else (got,)
        ref = ref if isinstance(ref, tuple) else (ref,)
        for g, r in zip(got, ref):
            err = float(jnp.max(jnp.abs(g.astype(jnp.float32) - r)))
            assert err < 0.1, f"kernel/reference mismatch: max|diff|={err}"

    # 4x4, single row tile, fused ToRGB epilogue
    check(params["style_block"], params["to_rgb"], 4, keys[0:3])
    if params["n_blocks"] > 1:
        # 8x8, multiple row tiles (exercises the halo path), no ToRGB
        check(params["blocks"][0]["sb1"], None, 8, keys[3:6])


# ---------------------------------------------------------------------------
# Main
# ---------------------------------------------------------------------------

if __name__ == "__main__":
    LOG_RES = 4          # resolutions 4 -> 8 -> 16 ; features [32, 16, 8] (n_features=8)
    W_DIM = 32
    CLIP_DIM = 16
    N_FEATURES = 8
    BATCH = 2
    MAX_TILE_PIXELS = 32   # tiny budget so the 8x8 / 16x16 layers run multi-row-tile halos

    key = jax.random.PRNGKey(0)
    kp, kw, kc, kn, kchk = jax.random.split(key, 5)

    params = init_generator_params(kp, LOG_RES, W_DIM, CLIP_DIM, n_features=N_FEATURES)
    n_blocks = params["n_blocks"]

    w = jax.random.normal(kw, (n_blocks, BATCH, W_DIM), jnp.float32)
    clip_embedding = jax.random.normal(kc, (BATCH, CLIP_DIM), jnp.float32)

    noise_keys = jax.random.split(kn, 2 * n_blocks)
    input_noise = []
    for i in range(n_blocks):
        res = 4 * 2 ** i
        input_noise.append(
            (jax.random.normal(noise_keys[2 * i], (BATCH, 1, res, res), jnp.float32),
             jax.random.normal(noise_keys[2 * i + 1], (BATCH, 1, res, res), jnp.float32)))

    # correctness: fused kernel vs pure-JAX reference (single- and multi-tile paths)
    _self_check(params, kchk, MAX_TILE_PIXELS)

    rgb = generator_forward(params, w, input_noise, clip_embedding,
                            max_tile_pixels=MAX_TILE_PIXELS)
    rgb = jax.block_until_ready(rgb)

    final_res = 4 * 2 ** (n_blocks - 1)
    assert rgb.shape == (BATCH, 3, final_res, final_res), rgb.shape
    assert bool(jnp.all(jnp.isfinite(rgb)))
    print("KERNEL_OK")
</pallas_src>

<mosaic_0001>
module attributes {stable_mosaic.version = 11 : i64} {
  func.func @_style_block_kernel(%arg0: i32, %arg1: i32, %arg2: memref<1x38x32xbf16, #tpu.memory_space<vmem>>, %arg3: memref<1x1x32xf32, #tpu.memory_space<vmem>>, %arg4: memref<1x1x128xf32, #tpu.memory_space<vmem>>, %arg5: memref<9x32x128xbf16, #tpu.memory_space<vmem>>, %arg6: memref<1x24x1xbf16, #tpu.memory_space<vmem>>, %arg7: memref<1xf32, #tpu.memory_space<smem>>, %arg8: memref<1x128xf32, #tpu.memory_space<vmem>>, %arg9: memref<1x1x128xf32, #tpu.memory_space<vmem>>, %arg10: memref<128x128xbf16, #tpu.memory_space<vmem>>, %arg11: memref<1x128xf32, #tpu.memory_space<vmem>>, %arg12: memref<1x24x128xbf16, #tpu.memory_space<vmem>>, %arg13: memref<1x24x128xbf16, #tpu.memory_space<vmem>>, %arg14: memref<38x32xbf16, #tpu.memory_space<vmem>>) attributes {dimension_semantics = [#tpu.dimension_semantics<parallel>, #tpu.dimension_semantics<parallel>], iteration_bounds = array<i64: 2, 1>, scalar_prefetch = 0 : i64, scratch_operands = 1 : i64, tpu.core_type = #tpu.core_type<tc>, window_params = [{transform_indices = @transform_0, window_bounds = array<i64: 1, 38, 32>}, {transform_indices = @transform_1, window_bounds = array<i64: 1, 1, 32>}, {transform_indices = @transform_2, window_bounds = array<i64: 1, 1, 128>}, {pipeline_mode = #tpu.pipeline_mode<synchronous>, transform_indices = @transform_3, window_bounds = array<i64: 9, 32, 128>}, {transform_indices = @transform_4, window_bounds = array<i64: 1, 24, 1>}, {transform_indices = @transform_5, window_bounds = array<i64: 1>}, {pipeline_mode = #tpu.pipeline_mode<synchronous>, transform_indices = @transform_6, window_bounds = array<i64: 1, 128>}, {transform_indices = @transform_7, window_bounds = array<i64: 1, 1, 128>}, {pipeline_mode = #tpu.pipeline_mode<synchronous>, transform_indices = @transform_8, window_bounds = array<i64: 128, 128>}, {pipeline_mode = #tpu.pipeline_mode<synchronous>, transform_indices = @transform_9, window_bounds = array<i64: 1, 128>}, {transform_indices = @transform_10, window_bounds = array<i64: 1, 24, 128>}, {transform_indices = @transform_11, window_bounds = array<i64: 1, 24, 128>}]} {
    %c0 = arith.constant 0 : index
    %c0_0 = arith.constant 0 : index
    %c0_1 = arith.constant 0 : index
    %0 = vector.load %arg2[%c0, %c0_0, %c0_1] : memref<1x38x32xbf16, #tpu.memory_space<vmem>>, vector<1x38x32xbf16>
    %1 = vector.shape_cast %0 : vector<1x38x32xbf16> to vector<38x32xbf16>
    %c0_2 = arith.constant 0 : index
    %c0_3 = arith.constant 0 : index
    %c0_4 = arith.constant 0 : index
    %2 = vector.load %arg3[%c0_2, %c0_3, %c0_4] : memref<1x1x32xf32, #tpu.memory_space<vmem>>, vector<1x1x32xf32>
    %3 = vector.shape_cast %2 : vector<1x1x32xf32> to vector<1x32xf32>
    %4 = arith.extf %1 : vector<38x32xbf16> to vector<38x32xf32>
    %5 = vector.broadcast %3 : vector<1x32xf32> to vector<38x32xf32>
    %6 = arith.mulf %4, %5 : vector<38x32xf32>
    %7 = arith.truncf %6 : vector<38x32xf32> to vector<38x32xbf16>
    %c0_5 = arith.constant 0 : index
    %c0_6 = arith.constant 0 : index
    %8 = vector.load %arg14[%c0_5, %c0_6] : memref<38x32xbf16, #tpu.memory_space<vmem>>, vector<38x32xbf16>
    tpu.vector_store %arg14[%c0_5, %c0_6], %7 {strides = array<i32>} : memref<38x32xbf16, #tpu.memory_space<vmem>>, vector<38x32xbf16>,
    %cst = arith.constant 0.000000e+00 : f32
    %9 = vector.broadcast %cst : f32 to vector<24x128xf32>
    %c0_7 = arith.constant 0 : index
    %c0_8 = arith.constant 0 : index
    %10 = vector.load %arg14[%c0_7, %c0_8] : memref<38x32xbf16, #tpu.memory_space<vmem>>, vector<24x32xbf16>
    %c0_9 = arith.constant 0 : index
    %c0_10 = arith.constant 0 : index
    %c0_11 = arith.constant 0 : index
    %11 = vector.load %arg5[%c0_9, %c0_10, %c0_11] : memref<9x32x128xbf16, #tpu.memory_space<vmem>>, vector<1x32x128xbf16>
    %12 = vector.shape_cast %11 : vector<1x32x128xbf16> to vector<32x128xbf16>
    %cst_12 = arith.constant dense<0.000000e+00> : vector<24x128xf32>
    %13 = tpu.matmul %10, %12, %cst_12 {dimension_numbers = #tpu.dot_dimension_numbers<[1], [0], [0], [1], [0, 0, 1, 1], [], []>} : vector<24x32xbf16>, vector<32x128xbf16>, vector<24x128xf32> -> vector<24x128xf32>
    %14 = arith.addf %9, %13 : vector<24x128xf32>
    %c1 = arith.constant 1 : index
    %c0_13 = arith.constant 0 : index
    %15 = vector.load %arg14[%c1, %c0_13] : memref<38x32xbf16, #tpu.memory_space<vmem>>, vector<24x32xbf16>
    %c1_14 = arith.constant 1 : index
    %c0_15 = arith.constant 0 : index
    %c0_16 = arith.constant 0 : index
    %16 = vector.load %arg5[%c1_14, %c0_15, %c0_16] : memref<9x32x128xbf16, #tpu.memory_space<vmem>>, vector<1x32x128xbf16>
    %17 = vector.shape_cast %16 : vector<1x32x128xbf16> to vector<32x128xbf16>
    %cst_17 = arith.constant dense<0.000000e+00> : vector<24x128xf32>
    %18 = tpu.matmul %15, %17, %cst_17 {dimension_numbers = #tpu.dot_dimension_numbers<[1], [0], [0], [1], [0, 0, 1, 1], [], []>} : vector<24x32xbf16>, vector<32x128xbf16>, vector<24x128xf32> -> vector<24x128xf32>
    %19 = arith.addf %14, %18 : vector<24x128xf32>
    %c2 = arith.constant 2 : index
    %c0_18 = arith.constant 0 : index
    %20 = vector.load %arg14[%c2, %c0_18] : memref<38x32xbf16, #tpu.memory_space<vmem>>, vector<24x32xbf16>
    %c2_19 = arith.constant 2 : index
    %c0_20 = arith.constant 0 : index
    %c0_21 = arith.constant 0 : index
    %21 = vector.load %arg5[%c2_19, %c0_20, %c0_21] : memref<9x32x128xbf16, #tpu.memory_space<vmem>>, vector<1x32x128xbf16>
    %22 = vector.shape_cast %21 : vector<1x32x128xbf16> to vector<32x128xbf16>
    %cst_22 = arith.constant dense<0.000000e+00> : vector<24x128xf32>
    %23 = tpu.matmul %20, %22, %cst_22 {dimension_numbers = #tpu.dot_dimension_numbers<[1], [0], [0], [1], [0, 0, 1, 1], [], []>} : vector<24x32xbf16>, vector<32x128xbf16>, vector<24x128xf32> -> vector<24x128xf32>
    %24 = arith.addf %19, %23 : vector<24x128xf32>
    %c6 = arith.constant 6 : index
    %c0_23 = arith.constant 0 : index
    %25 = vector.load %arg14[%c6, %c0_23] : memref<38x32xbf16, #tpu.memory_space<vmem>>, vector<24x32xbf16>
    %c3 = arith.constant 3 : index
    %c0_24 = arith.constant 0 : index
    %c0_25 = arith.constant 0 : index
    %26 = vector.load %arg5[%c3, %c0_24, %c0_25] : memref<9x32x128xbf16, #tpu.memory_space<vmem>>, vector<1x32x128xbf16>
    %27 = vector.shape_cast %26 : vector<1x32x128xbf16> to vector<32x128xbf16>
    %cst_26 = arith.constant dense<0.000000e+00> : vector<24x128xf32>
    %28 = tpu.matmul %25, %27, %cst_26 {dimension_numbers = #tpu.dot_dimension_numbers<[1], [0], [0], [1], [0, 0, 1, 1], [], []>} : vector<24x32xbf16>, vector<32x128xbf16>, vector<24x128xf32> -> vector<24x128xf32>
    %29 = arith.addf %24, %28 : vector<24x128xf32>
    %c7 = arith.constant 7 : index
    %c0_27 = arith.constant 0 : index
    %30 = vector.load %arg14[%c7, %c0_27] : memref<38x32xbf16, #tpu.memory_space<vmem>>, vector<24x32xbf16>
    %c4 = arith.constant 4 : index
    %c0_28 = arith.constant 0 : index
    %c0_29 = arith.constant 0 : index
    %31 = vector.load %arg5[%c4, %c0_28, %c0_29] : memref<9x32x128xbf16, #tpu.memory_space<vmem>>, vector<1x32x128xbf16>
    %32 = vector.shape_cast %31 : vector<1x32x128xbf16> to vector<32x128xbf16>
    %cst_30 = arith.constant dense<0.000000e+00> : vector<24x128xf32>
    %33 = tpu.matmul %30, %32, %cst_30 {dimension_numbers = #tpu.dot_dimension_numbers<[1], [0], [0], [1], [0, 0, 1, 1], [], []>} : vector<24x32xbf16>, vector<32x128xbf16>, vector<24x128xf32> -> vector<24x128xf32>
    %34 = arith.addf %29, %33 : vector<24x128xf32>
    %c8 = arith.constant 8 : index
    %c0_31 = arith.constant 0 : index
    %35 = vector.load %arg14[%c8, %c0_31] : memref<38x32xbf16, #tpu.memory_space<vmem>>, vector<24x32xbf16>
    %c5 = arith.constant 5 : index
    %c0_32 = arith.constant 0 : index
    %c0_33 = arith.constant 0 : index
    %36 = vector.load %arg5[%c5, %c0_32, %c0_33] : memref<9x32x128xbf16, #tpu.memory_space<vmem>>, vector<1x32x128xbf16>
    %37 = vector.shape_cast %36 : vector<1x32x128xbf16> to vector<32x128xbf16>
    %cst_34 = arith.constant dense<0.000000e+00> : vector<24x128xf32>
    %38 = tpu.matmul %35, %37, %cst_34 {dimension_numbers = #tpu.dot_dimension_numbers<[1], [0], [0], [1], [0, 0, 1, 1], [], []>} : vector<24x32xbf16>, vector<32x128xbf16>, vector<24x128xf32> -> vector<24x128xf32>
    %39 = arith.addf %34, %38 : vector<24x128xf32>
    %c12 = arith.constant 12 : index
    %c0_35 = arith.constant 0 : index
    %40 = vector.load %arg14[%c12, %c0_35] : memref<38x32xbf16, #tpu.memory_space<vmem>>, vector<24x32xbf16>
    %c6_36 = arith.constant 6 : index
    %c0_37 = arith.constant 0 : index
    %c0_38 = arith.constant 0 : index
    %41 = vector.load %arg5[%c6_36, %c0_37, %c0_38] : memref<9x32x128xbf16, #tpu.memory_space<vmem>>, vector<1x32x128xbf16>
    %42 = vector.shape_cast %41 : vector<1x32x128xbf16> to vector<32x128xbf16>
    %cst_39 = arith.constant dense<0.000000e+00> : vector<24x128xf32>
    %43 = tpu.matmul %40, %42, %cst_39 {dimension_numbers = #tpu.dot_dimension_numbers<[1], [0], [0], [1], [0, 0, 1, 1], [], []>} : vector<24x32xbf16>, vector<32x128xbf16>, vector<24x128xf32> -> vector<24x128xf32>
    %44 = arith.addf %39, %43 : vector<24x128xf32>
    %c13 = arith.constant 13 : index
    %c0_40 = arith.constant 0 : index
    %45 = vector.load %arg14[%c13, %c0_40] : memref<38x32xbf16, #tpu.memory_space<vmem>>, vector<24x32xbf16>
    %c7_41 = arith.constant 7 : index
    %c0_42 = arith.constant 0 : index
    %c0_43 = arith.constant 0 : index
    %46 = vector.load %arg5[%c7_41, %c0_42, %c0_43] : memref<9x32x128xbf16, #tpu.memory_space<vmem>>, vector<1x32x128xbf16>
    %47 = vector.shape_cast %46 : vector<1x32x128xbf16> to vector<32x128xbf16>
    %cst_44 = arith.constant dense<0.000000e+00> : vector<24x128xf32>
    %48 = tpu.matmul %45, %47, %cst_44 {dimension_numbers = #tpu.dot_dimension_numbers<[1], [0], [0], [1], [0, 0, 1, 1], [], []>} : vector<24x32xbf16>, vector<32x128xbf16>, vector<24x128xf32> -> vector<24x128xf32>
    %49 = arith.addf %44, %48 : vector<24x128xf32>
    %c14 = arith.constant 14 : index
    %c0_45 = arith.constant 0 : index
    %50 = vector.load %arg14[%c14, %c0_45] : memref<38x32xbf16, #tpu.memory_space<vmem>>, vector<24x32xbf16>
    %c8_46 = arith.constant 8 : index
    %c0_47 = arith.constant 0 : index
    %c0_48 = arith.constant 0 : index
    %51 = vector.load %arg5[%c8_46, %c0_47, %c0_48] : memref<9x32x128xbf16, #tpu.memory_space<vmem>>, vector<1x32x128xbf16>
    %52 = vector.shape_cast %51 : vector<1x32x128xbf16> to vector<32x128xbf16>
    %cst_49 = arith.constant dense<0.000000e+00> : vector<24x128xf32>
    %53 = tpu.matmul %50, %52, %cst_49 {dimension_numbers = #tpu.dot_dimension_numbers<[1], [0], [0], [1], [0, 0, 1, 1], [], []>} : vector<24x32xbf16>, vector<32x128xbf16>, vector<24x128xf32> -> vector<24x128xf32>
    %54 = arith.addf %49, %53 : vector<24x128xf32>
    %c0_50 = arith.constant 0 : index
    %c0_51 = arith.constant 0 : index
    %c0_52 = arith.constant 0 : index
    %55 = vector.load %arg4[%c0_50, %c0_51, %c0_52] : memref<1x1x128xf32, #tpu.memory_space<vmem>>, vector<1x1x128xf32>
    %56 = vector.shape_cast %55 : vector<1x1x128xf32> to vector<1x128xf32>
    %57 = vector.broadcast %56 : vector<1x128xf32> to vector<24x128xf32>
    %58 = arith.mulf %54, %57 : vector<24x128xf32>
    %c0_53 = arith.constant 0 : index
    %59 = memref.load %arg7[%c0_53] : memref<1xf32, #tpu.memory_space<smem>>
    %c0_54 = arith.constant 0 : index
    %c0_55 = arith.constant 0 : index
    %c0_56 = arith.constant 0 : index
    %60 = vector.load %arg6[%c0_54, %c0_55, %c0_56] : memref<1x24x1xbf16, #tpu.memory_space<vmem>>, vector<1x24x1xbf16>
    %61 = vector.shape_cast %60 : vector<1x24x1xbf16> to vector<24x1xbf16>
    %62 = arith.extf %61 : vector<24x1xbf16> to vector<24x1xf32>
    %63 = vector.broadcast %59 : f32 to vector<24x1xf32>
    %64 = arith.mulf %63, %62 : vector<24x1xf32>
    %65 = vector.broadcast %64 : vector<24x1xf32> to vector<24x128xf32>
    %66 = arith.addf %58, %65 : vector<24x128xf32>
    %c0_57 = arith.constant 0 : index
    %c0_58 = arith.constant 0 : index
    %67 = vector.load %arg8[%c0_57, %c0_58] : memref<1x128xf32, #tpu.memory_space<vmem>>, vector<1x128xf32>
    %68 = vector.broadcast %67 : vector<1x128xf32> to vector<24x128xf32>
    %69 = arith.addf %66, %68 : vector<24x128xf32>
    %cst_59 = arith.constant 0.000000e+00 : f32
    %70 = vector.broadcast %cst_59 : f32 to vector<24x128xf32>
    %71 = arith.cmpf oge, %69, %70 : vector<24x128xf32>
    %cst_60 = arith.constant 2.000000e-01 : f32
    %72 = vector.broadcast %cst_60 : f32 to vector<24x128xf32>
    %73 = arith.mulf %72, %69 : vector<24x128xf32>
    %74 = arith.select %71, %69, %73 : vector<24x128xi1>, vector<24x128xf32>
    %75 = arith.truncf %74 : vector<24x128xf32> to vector<24x128xbf16>
    %c0_61 = arith.constant 0 : index
    %c0_62 = arith.constant 0 : index
    %c0_63 = arith.constant 0 : index
    %76 = vector.load %arg12[%c0_61, %c0_62, %c0_63] : memref<1x24x128xbf16, #tpu.memory_space<vmem>>, vector<1x24x128xbf16>
    %77 = vector.shape_cast %76 : vector<1x24x128xbf16> to vector<24x128xbf16>
    %78 = vector.shape_cast %75 : vector<24x128xbf16> to vector<1x24x128xbf16>
    tpu.vector_store %arg12[%c0_61, %c0_62, %c0_63], %78 {strides = array<i32>} : memref<1x24x128xbf16, #tpu.memory_space<vmem>>, vector<1x24x128xbf16>,
    %c0_64 = arith.constant 0 : index
    %c0_65 = arith.constant 0 : index
    %c0_66 = arith.constant 0 : index
    %79 = vector.load %arg9[%c0_64, %c0_65, %c0_66] : memref<1x1x128xf32, #tpu.memory_space<vmem>>, vector<1x1x128xf32>
    %80 = vector.shape_cast %79 : vector<1x1x128xf32> to vector<1x128xf32>
    %81 = vector.broadcast %80 : vector<1x128xf32> to vector<24x128xf32>
    %82 = arith.mulf %74, %81 : vector<24x128xf32>
    %83 = arith.truncf %82 : vector<24x128xf32> to vector<24x128xbf16>
    %c0_67 = arith.constant 0 : index
    %c0_68 = arith.constant 0 : index
    %84 = vector.load %arg10[%c0_67, %c0_68] : memref<128x128xbf16, #tpu.memory_space<vmem>>, vector<128x128xbf16>
    %cst_69 = arith.constant dense<0.000000e+00> : vector<24x128xf32>
    %85 = tpu.matmul %83, %84, %cst_69 {dimension_numbers = #tpu.dot_dimension_numbers<[1], [0], [0], [1], [0, 0, 1, 1], [], []>} : vector<24x128xbf16>, vector<128x128xbf16>, vector<24x128xf32> -> vector<24x128xf32>
    %c0_70 = arith.constant 0 : index
    %c0_71 = arith.constant 0 : index
    %86 = vector.load %arg11[%c0_70, %c0_71] : memref<1x128xf32, #tpu.memory_space<vmem>>, vector<1x128xf32>
    %87 = vector.broadcast %86 : vector<1x128xf32> to vector<24x128xf32>
    %88 = arith.addf %85, %87 : vector<24x128xf32>
    %cst_72 = arith.constant 0.000000e+00 : f32
    %89 = vector.broadcast %cst_72 : f32 to vector<24x128xf32>
    %90 = arith.cmpf oge, %88, %89 : vector<24x128xf32>
    %cst_73 = arith.constant 2.000000e-01 : f32
    %91 = vector.broadcast %cst_73 : f32 to vector<24x128xf32>
    %92 = arith.mulf %91, %88 : vector<24x128xf32>
    %93 = arith.select %90, %88, %92 : vector<24x128xi1>, vector<24x128xf32>
    %94 = arith.truncf %93 : vector<24x128xf32> to vector<24x128xbf16>
    %c0_74 = arith.constant 0 : index
    %c0_75 = arith.constant 0 : index
    %c0_76 = arith.constant 0 : index
    %95 = vector.load %arg13[%c0_74, %c0_75, %c0_76] : memref<1x24x128xbf16, #tpu.memory_space<vmem>>, vector<1x24x128xbf16>
    %96 = vector.shape_cast %95 : vector<1x24x128xbf16> to vector<24x128xbf16>
    %97 = vector.shape_cast %94 : vector<24x128xbf16> to vector<1x24x128xbf16>
    tpu.vector_store %arg13[%c0_74, %c0_75, %c0_76], %97 {strides = array<i32>} : memref<1x24x128xbf16, #tpu.memory_space<vmem>>, vector<1x24x128xbf16>,
    return
  }
  func.func @transform_0(%arg0: i32, %arg1: i32) -> (i32, i32, i32) {
    %c1_i32 = arith.constant 1 : i32
    %0 = arith.muli %arg0, %c1_i32 : i32
    %1 = arith.addi %0, %arg1 : i32
    %c0_i32 = arith.constant 0 : i32
    %c0_i32_0 = arith.constant 0 : i32
    %c0_i32_1 = arith.constant 0 : i32
    return %1, %c0_i32, %c0_i32_0 : i32, i32, i32
  }
  func.func @transform_1(%arg0: i32, %arg1: i32) -> (i32, i32, i32) {
    %c0_i32 = arith.constant 0 : i32
    %c0_i32_0 = arith.constant 0 : i32
    %c0_i32_1 = arith.constant 0 : i32
    return %arg0, %c0_i32, %c0_i32_0 : i32, i32, i32
  }
  func.func @transform_2(%arg0: i32, %arg1: i32) -> (i32, i32, i32) {
    %c0_i32 = arith.constant 0 : i32
    %c0_i32_0 = arith.constant 0 : i32
    %c0_i32_1 = arith.constant 0 : i32
    return %arg0, %c0_i32, %c0_i32_0 : i32, i32, i32
  }
  func.func @transform_3(%arg0: i32, %arg1: i32) -> (i32, i32, i32) {
    %c0_i32 = arith.constant 0 : i32
    %c0_i32_0 = arith.constant 0 : i32
    %c0_i32_1 = arith.constant 0 : i32
    %c0_i32_2 = arith.constant 0 : i32
    return %c0_i32, %c0_i32_0, %c0_i32_1 : i32, i32, i32
  }
  func.func @transform_4(%arg0: i32, %arg1: i32) -> (i32, i32, i32) {
    %c0_i32 = arith.constant 0 : i32
    %c0_i32_0 = arith.constant 0 : i32
    return %arg0, %arg1, %c0_i32 : i32, i32, i32
  }
  func.func @transform_5(%arg0: i32, %arg1: i32) -> i32 {
    %c0_i32 = arith.constant 0 : i32
    %c0_i32_0 = arith.constant 0 : i32
    return %c0_i32 : i32
  }
  func.func @transform_6(%arg0: i32, %arg1: i32) -> (i32, i32) {
    %c0_i32 = arith.constant 0 : i32
    %c0_i32_0 = arith.constant 0 : i32
    %c0_i32_1 = arith.constant 0 : i32
    return %c0_i32, %c0_i32_0 : i32, i32
  }
  func.func @transform_7(%arg0: i32, %arg1: i32) -> (i32, i32, i32) {
    %c0_i32 = arith.constant 0 : i32
    %c0_i32_0 = arith.constant 0 : i32
    %c0_i32_1 = arith.constant 0 : i32
    return %arg0, %c0_i32, %c0_i32_0 : i32, i32, i32
  }
  func.func @transform_8(%arg0: i32, %arg1: i32) -> (i32, i32) {
    %c0_i32 = arith.constant 0 : i32
    %c0_i32_0 = arith.constant 0 : i32
    %c0_i32_1 = arith.constant 0 : i32
    return %c0_i32, %c0_i32_0 : i32, i32
  }
  func.func @transform_9(%arg0: i32, %arg1: i32) -> (i32, i32) {
    %c0_i32 = arith.constant 0 : i32
    %c0_i32_0 = arith.constant 0 : i32
    %c0_i32_1 = arith.constant 0 : i32
    return %c0_i32, %c0_i32_0 : i32, i32
  }
  func.func @transform_10(%arg0: i32, %arg1: i32) -> (i32, i32, i32) {
    %c0_i32 = arith.constant 0 : i32
    %c0_i32_0 = arith.constant 0 : i32
    return %arg0, %arg1, %c0_i32 : i32, i32, i32
  }
  func.func @transform_11(%arg0: i32, %arg1: i32) -> (i32, i32, i32) {
    %c0_i32 = arith.constant 0 : i32
    %c0_i32_0 = arith.constant 0 : i32
    return %arg0, %arg1, %c0_i32 : i32, i32, i32
  }
}

</mosaic_0001>

<bundles_post_ra>
// kernel: tpu_custom_call.1
= control target key start
LH: loop header
LB: loop body
LE: loop exit
PB: predicated region body
PF: predicated region fallthrough
CT: control target
= control target key end

     0   :  { %s2713_s0 = inlined_call_operand.vmem [shape: bf16[2,38,32], index: 0, kind: input, shape index: {}]   ;;  %s2714_s1 = inlined_call_operand.vmem [shape: f32[2,1,32], index: 1, kind: input, shape index: {}]   ;;  %s2715_s2 = inlined_call_operand.vmem [shape: f32[2,1,128], index: 2, kind: input, shape index: {}]   ;;  %s2716_s3 = inlined_call_operand.hbm [shape: bf16[9,32,128], index: 3, kind: input, shape index: {}]   ;;  %s2717_s4 = inlined_call_operand.vmem [shape: bf16[2,24,1], index: 4, kind: input, shape index: {}]   ;;  %s2718_s5 = inlined_call_operand.<no memory space> [shape: f32[1], index: 5, kind: input, shape index: {}]   ;;  %s2719_s6 = inlined_call_operand.vmem [shape: f32[1,128], index: 6, kind: input, shape index: {}]   ;;  %s2720_s7 = inlined_call_operand.vmem [shape: f32[2,1,128], index: 7, kind: input, shape index: {}]   ;;  %s2721_s8 = inlined_call_operand.vmem [shape: bf16[128,128], index: 8, kind: input, shape index: {}]   ;;  %s2722_s9 = inlined_call_operand.vmem [shape: f32[1,128], index: 9, kind: input, shape index: {}]   ;;  %s2723_s10 = inlined_call_operand.hbm [shape: bf16[2,24,128], index: 10, kind: output, shape index: {0}]   ;;  %s2724_s11 = inlined_call_operand.hbm [shape: bf16[2,24,128], index: 11, kind: output, shape index: {1}]  }
   0x1   :  { %17 = sst [smem:[#allocation3]] %s2718_s5 }
   0x2   :  { %18 = vsyncpa [#allocation5], 0 }
   0x3   :  { %19 = vsyncpa [#allocation6], 0 }
   0x4   :  { %21 = vsyncpa [#allocation6 + $0x1], 0 }
   0x5   :  { %22 = vsyncpa [#allocation9], 0 }
   0x6   :  { %24 = vsyncpa [#allocation9 + $0x1], 0  ;;  %s2406_s19 = smov 0   ;;  %s2408_s20 = smov 0  }
   0x7   :  { %s2410_s21 = smov 0   ;;  %s2412_s22 = smov 0  }
   0x8   :  { %s2414_s23 = smov 0   ;;  %s2416_s24 = smov 0  }
   0x9 LB: > { %2735 = sst [smem:[#allocation13_spill]] %s2329_s23  ;;  %s1781_s5 = sadd.s32 4294967295, %s2333_s24   ;;  %s2333_s24 = sphi %s2416_s24, %s30_s24   ;;  %s2329_s23 = sphi %s2414_s23, %s2751_s23   ;;  %s2325_s22 = sphi %s2412_s22, %s2750_s22   ;;  %s2321_s21 = sphi %s2410_s21, %s2754_s21   ;;  %s2317_s20 = sphi %s2408_s20, %s2753_s20   ;;  %s2313_s19 = sphi %s2406_s19, %s2752_s19  }
   0xa   : > { %s1782_s25 = sadd.s32 4294967294, %s2333_s24   ;;  %s42_s26 = sadd.s32 1, %s2329_s23 }
   0xb   : > { %s290_s27 = sadd.s32 1, %s2321_s21  ;;  %p44_p0 = scmp.ge.s32.totalorder %s42_s26, 2 }
   0xc   : > { %p300_p1 = scmp.ne.s32.totalorder %s2321_s21, %s2317_s20  ;;  %p301_p2 = scmp.eq.s32.totalorder %s1781_s5, 1 }
   0xd   : > { %p306_p3 = scmp.ne.s32.totalorder %s2317_s20, %s2313_s19  ;;  %s2756_s26 = smov (%p44_p0, %s42_s26), 0 }
   0xe   : > { %2736 = sst [smem:[#allocation14_spill]] %s2756_s26  ;;  %p2446_p4 = por %p301_p2, %p300_p1 }
   0xf   : > { %p307_p5 = scmp.eq.s32.totalorder %s1782_s25, 1  ;;  %s285_s29 = ssub.s32 %s2329_s23, %s2756_s26 }
  0x10   : > { %s2737_s28 = scalar_select %p2446_p4, 1, 0 }
  0x11   : > { %p1783_p6 = scmp.ge.s32.totalorder %s2333_s24, 1  ;;  %p288_p7 = scmp.eq.s32.totalorder %s285_s29, 0 }
  0x12   : > { %p2453_p8 = por %p307_p5, %p306_p3  ;;  %p342_p9 = scmp.lt.s32.totalorder %s2333_s24, 3 }
  0x13   : > { %s2459_s12 = scalar_select %p288_p7, %s2321_s21, %s290_s27  }
  0x14   : > { %s2738_s30 = scalar_select %p2453_p8, 1, 0 }
  0x15   : > { %p2461_p10 = pnand %p1783_p6, %p342_p9  ;;  %p2465_p11 = scmp.eq.s32.totalorder %s1781_s5, 0 }
  0x16   : > { %s2335_s15 = smov [#allocation4]   ;;  %s2191_s27 = scalar_lea.hbm %s2716_s3, 2304 }
  0x17   : > { %s2739_s13 = scalar_select %p2461_p10, 1, 0 }
  0x18   : > { %s2740_s14 = scalar_select %p2465_p11, 1, 0 }
  0x19   : > { %p2083_p12 = pneg %p2461_p10  ;;  %s354_s16 = sshll.u32 %s2335_s15, 4  ;;  %s355_s16 = int_to_ptr.vmem [resolvable:$true] %s354_s16 }
  0x1a   : > { %p2192_p0 = scmp.ne.s32.totalorder %s2716_s3, %s2191_s27  ;;  %p2198_p5 = scmp.lt.u32.totalorder %s2191_s27, %s2716_s3 }
  0x1b   : > { %p2473_p13 = pnand %p2465_p11, %p2083_p12 }
  0x1d   : > { %p2193_p1 = pneg %p2473_p13 }
  0x1f   : > { %p2194_p2 = pnand %p2193_p1, %p2192_p0 }
  0x21   : > { %p2195_p3 = pneg %p2194_p2 }
  0x23   : > { %p2200_p6 = pnand %p2198_p5, %p2195_p3 }
  0x25   : > { %2203 = shalt.err (!%p2200_p6)
}
  0x26   : > { %s2204_s23 = scalar_lea.vmem %s355_s16, 2304  ;;  %p2212_p8 = scmp.lt.s32.totalorder %s355_s16, %s355_s16 }
  0x27   : > { %p2205_p7 = scmp.ne.s32.totalorder %s355_s16, %s2204_s23  ;;  %p2213_p4 = scmp.lt.s32.totalorder %s2204_s23, %s2204_s23 }
  0x29   : > { %p2207_p9 = pnand %p2205_p7, %p2193_p1  ;;  %p2214_p11 = por %p2213_p4, %p2212_p8 }
  0x2b   : > { %p2208_p12 = pneg %p2207_p9 }
  0x2d   : > { %p2215_p10 = pnand %p2214_p11, %p2208_p12 }
  0x2f   : > { %2218 = shalt.err (!%p2215_p10)
}
  0x30   : > { %s2336_s18 = smov 64   ;;  %s2337_s25 = smov 4  }
  0x31   : > { %2086 = dma.hbm_to_vmem [thread:$0]  (!%p2473_p13), %s2716_s3, 2304, %s355_s16, [#allocation5], %s2336_s18, %s2336_s18, %s2337_s25  }
  0x32   : > { %p2742_p0 = scmp.ne.s32.totalorder %s2739_s13, 0 }
  0x33   : > { %p2743_p2 = scmp.ne.s32.totalorder (!%p2742_p0), %s2740_s14, 0 }
  0x34   : > { %423 = sbr.rel (%p2742_p0) target bundleno = 629 (0x275), region = 60 }
  0x3b   : > { %2300 = dma.done.wait (%p2743_p2), [#allocation5], 2304  }
  0x3c   : > { %2302 = vsyncadd (%p2743_p2), [#allocation5], 4294964992  ;;  %p488_p4 = scmp.lt.s32.totalorder %s2325_s22, 1  ;;  %v2338_v0 = vmov 0   ;;  %v2153_v1 = vld [vmem:[#allocation4 + $0x20] sm:$0xff]   ;;  %v2154_v2 = vld [vmem:[#allocation4 + $0x28] sm:$0xff]  }
  0x3d   : > { %2151 = vset.pattern.permute.xlu0 %v2338_v0  ;;  %2152 = vset.pattern.permute.xlu1 %v2338_v0  ;;  %v2515_v10 = vld [vmem:[#allocation4 + $0x30] sm:$0xff]   ;;  %vm559_vm0 = vcmask 257024   ;;  %v2170_v20 = vld [vmem:[#allocation4 + $0x18] sm:$0xff]   ;;  %vm747_vm1 = vcmask 1046528   ;;  %s2519_s18 = sld [smem:[#allocation3]]  ;;  %vm564_vm2 = vcmask 256000  }
  0x3e   : > { %s2501_s23 = scalar_select %p488_p4, %s2325_s22, 1  ;;  %1963 = vmatprep.subr.bf16.mxu0 %v2153_v1  ;;  %v2169_v19 = vld [vmem:[#allocation4 + $0x10] sm:$0xff]   ;;  %v2521_v23 = vld [vmem:[#allocation4] sm:$0xff]   ;;  %vm833_vm3 = vcmask 1044480   ;;  %vm617_vm4 = vcmask 261120   ;;  %v2158_v49 = vld [vmem:[#allocation4 + $0x38] sm:$0xff]  }
  0x3f   : > { %1964 = vmatpush3.bf16.msra.mxu0 %v2153_v1  ;;  %1947 = vmatprep.subr.bf16.mxu1 %v2169_v19  ;;  %vm589_vm5 = vsmask.f32 7424  ;;  %v2161_v60 = vld [vmem:[#allocation4 + $0x40] sm:$0xff]   ;;  %vm915_vm6 = vsmask.f32 4352  ;;  %vm1097_vm7 = vcmask 1045504  }
  0x40   : > { %s2071_s26 = smul.u32 20, %s2501_s23  ;;  %s496_s14 = scalar_lea.vmem %s2714_s1, %s2501_s23  ;;  %1965 = vmatprep.subr.bf16.mxu0 %v2154_v2  ;;  %1948 = vmatpush3.bf16.msra.mxu1 %v2169_v19  ;;  %vm1179_vm8 = vsmask.f32 5376 }
  0x41   : > { %v1790_v5 = vld [vmem:[%s496_s14] ss:$0 sm:$0xff]  ;;  %1949 = vmatprep.subr.bf16.mxu1 %v2170_v20  ;;  %s2072_s25 = smul.u32 12, %s2501_s23  ;;  %s2601_s5 = sand.u32 1, %s2317_s20  }
  0x42   : > { %s2507_s17 = scalar_lea.vmem %s2713_s0, %s2071_s26  ;;  %s2732_s16 = smul.u32 12, %s2601_s5 }
  0x43   : > { %v1879_v3 = vld [vmem:[%s2507_s17] sm:$0xff]   ;;  %v1900_v4 = vld [vmem:[%s2507_s17 + $0x8] sm:$0xff]   ;;  %1966 = vmatpush3.bf16.msra.mxu0 %v2154_v2  ;;  %v520_v21 = vld [vmem:[%s2507_s17 + $0x10] sm:$0x7]  ;;  %s508_s26 = scalar_lea.vmem %s2717_s4, %s2072_s25  ;;  %v1364_v59 = vstv %s2519_s18  ;;  %s499_s25 = scalar_lea.vmem %s2715_s2, %s2501_s23 }
  0x44   : > { %v1880_v6 = vunpack.c.l.bf16 %v1879_v3  ;;  %v1881_v7 = vunpack.c.h.bf16 %v1879_v3  ;;  %v1884_v8 = vunpack.c.l.bf16 %v1900_v4  ;;  %v1885_v9 = vunpack.c.h.bf16 %v1900_v4  ;;  %1971 = vmatprep.subr.bf16.mxu0 %v2515_v10  ;;  %1950 = vmatpush3.bf16.msra.mxu1 %v2170_v20  ;;  %v1887_v58 = vld [vmem:[%s508_s26] sm:$0xff]   ;;  %s512_s27 = scalar_lea.vmem %s2720_s7, %s2501_s23  ;;  %s479_s15 = scalar_lea.vmem [#allocation7], %s2732_s16 }
  0x45   : > { %v526_v22 = vunpack.c.l.bf16 %v520_v21  ;;  %1955 = vmatprep.subr.bf16.mxu1 %v2521_v23  ;;  %v2178_v2 = vld [vmem:[#allocation4 + $0x8] sm:$0xff]   ;;  %v1888_v3 = vunpack.c.l.bf16 %v1887_v58  ;;  %s2731_s23 = smul.u32 192, %s2325_s22  ;;  %s1598_s14 = sshll.u32 %s479_s15, 4  ;;  %s2621_s14 = int_to_ptr.vmem [resolvable:$true] %s1598_s14 }
  0x46   : > { %v533_v11 = vmul.f32 %v1880_v6, %v1790_v5  ;;  %v534_v12 = vmul.f32 %v1881_v7, %v1790_v5  ;;  %v535_v13 = vmul.f32 %v1884_v8, %v1790_v5  ;;  %v536_v14 = vmul.f32 %v1885_v9, %v1790_v5  ;;  %s2219_s13 = scalar_lea.vmem %s2621_s14, 192  ;;  %p2744_p10 = scmp.ne.s32.totalorder %s2737_s28, 0 }
  0x47   : > { %v537_v27 = vmul.f32 %v1790_v5, %v526_v22  ;;  %v1360_v5 = vld [vmem:[%s508_s26 + $0x8] sm:$0xf]  ;;  %v1889_v6 = vunpack.c.h.bf16 %v1887_v58  ;;  %v1365_v7 = vmul.f32 %v1888_v3, %v1364_v59  ;;  %s2619_s29 = scalar_lea.hbm %s2723_s10, %s2731_s23  ;;  %s1578_s26 = scalar_lea.sflag [#allocation6], %s2601_s5 }
  0x48   : > { %v1867_v15 = vpack.c.bf16 %v533_v11, %v533_v11  ;;  %v1868_v16 = vpack.c.bf16 %v534_v12, %v534_v12  ;;  %v1869_v17 = vpack.c.bf16 %v535_v13, %v535_v13  ;;  %v1870_v18 = vpack.c.bf16 %v536_v14, %v536_v14  ;;  %v2162_v13 = vld [vmem:[#allocation4 + $0x48] sm:$0xff]   ;;  %v2188_v58 = vld [vmem:[%s2721_s8 + $0x28] sm:$0xff]   ;;  %p2220_p8 = scmp.ne.s32.totalorder %s2621_s14, %s2219_s13  ;;  %s2339_s17 = smov [#allocation7]  }
  0x49   : > { %v1871_v37 = vpack.c.bf16 %v537_v27, %v537_v27  ;;  %1370 = vperm.xlu0 %2151, %v1365_v7   ;;  %v1366_v11 = vmul.f32 %v1889_v6, %v1364_v59 }
  0x4a   : > { %560 = vst.msk [vmem:[#allocation2] sm:$0xf] %vm559_vm0, %v1867_v15  ;;  %561 = vst.msk [vmem:[#allocation2 + $0x4] sm:$0xf] %vm559_vm0, %v1868_v16  ;;  %v2164_v15 = vld [vmem:[#allocation4 + $0x50] sm:$0xff]   ;;  %p2221_p11 = pnand %p2220_p8, %p2744_p10 }
  0x4b   : > { %562 = vst.msk [vmem:[#allocation2 + $0x8] sm:$0xf] %vm559_vm0, %v1869_v17  ;;  %563 = vst.msk [vmem:[#allocation2 + $0xc] sm:$0xf] %vm559_vm0, %v1870_v18  ;;  %v2165_v18 = vld [vmem:[#allocation4 + $0x58] sm:$0xff]  }
  0x4c   : > { %565 = vst.msk [vmem:[#allocation2 + $0x10] sm:$0x7] %vm564_vm2, %v1871_v37  ;;  %p2222_p13 = pneg %p2221_p11 }
  0x4d   : > { %1375 = vperm.xlu0 %2151, %v1366_v11  }
  0x51   : > { %v2523_v24 = vld [vmem:[#allocation2 + $0x4] sm:$0xf]  ;;  %v738_v29 = vld [vmem:[#allocation2] sm:$0xe] }
  0x52   : > { %v2525_v25 = vld [vmem:[#allocation2 + $0x8] sm:$0xf]  ;;  %v573_v26 = vld [vmem:[#allocation2 + $0xc] sm:$0x1]  ;;  %v820_v30 = vld [vmem:[#allocation2] sm:$0x8]  ;;  %v1807_v32 = vcombine.low %v738_v29, %v2523_v24 }
  0x53   : > { %v1797_v28 = vcombine.low %v2525_v25, %v573_v26  ;;  %v821_v31 = vld [vmem:[#allocation2 + $0xc] sm:$0x7]  ;;  %v1812_v33 = vcombine.low %v820_v30, %v2523_v24  ;;  %v566_v36 = vld [vmem:[#allocation2] sm:$0xf]  ;;  %v1802_v16 = vcombine.low %v2525_v25, %v2525_v25  ;;  %v1823_v17 = vcombine.low %v2523_v24, %v2525_v25  ;;  %v1078_v19 = vld [vmem:[#allocation2 + $0x4] sm:$0xc] }
  0x54   : > { %v1813_v34 = vcombine.low %v2525_v25, %v821_v31  ;;  %v2531_v35 = vld [vmem:[#allocation2 + $0xc] sm:$0xf]  ;;  %v1796_v40 = vcombine.low %v566_v36, %v2523_v24  ;;  %v748_v41 = vrot.slane %v1807_v32, 1  ;;  %v1079_v20 = vld [vmem:[#allocation2 + $0x8] sm:$0xf]  ;;  %v2171_v32 = vld [vmem:[#allocation4 + $0x68] sm:$0xff]  }
  0x55   : > { %v749_v38 = vrot.slane %v1797_v28, 1  ;;  %v1818_v39 = vcombine.low %v2525_v25, %v2531_v35  ;;  %v834_v42 = vrot.slane %v1812_v33, 3  ;;  %v917_v44 = vshrl.u32 %v1812_v33, 16  ;;  %v1080_v21 = vld [vmem:[#allocation2 + $0xc] sm:$0xf] }
  0x56   : > { %v835_v43 = vrot.slane %v1813_v34, 3  ;;  %v920_v45 = vshll.u32 %v1812_v33, 16  ;;  %v591_v51 = vshrl.u32 %v1796_v40, 16  ;;  %v593_v52 = vshll.u32 %v1796_v40, 16  ;;  %v1081_v22 = vld [vmem:[#allocation2 + $0x10] sm:$0x3] }
  0x57   : > { %v925_v46 = vshrl.u32 %v1818_v39, 16  ;;  %v928_v47 = vshll.u32 %v1818_v39, 16  ;;  %v750_v48 = vsel %vm747_vm1, %v748_v41, %v749_v38  ;;  %v598_v53 = vshll.u32 %v1797_v28, 16 }
  0x58   : > { %v836_v50 = vsel %vm833_vm3, %v834_v42, %v835_v43  ;;  %1967 = vmatprep.mubr.msk.bf16.mxu0 %vm617_vm4, %v750_v48  ;;  %v595_v54 = vrot.slane %v593_v52, 1  ;;  %v602_v55 = vshrl.u32 %v1797_v28, 16  ;;  %v919_v56 = vrot.slane %v917_v44, 3  ;;  %v1170_v28 = vld [vmem:[#allocation2 + $0x10] sm:$0x7] }
  0x59   : > { %1968 = vmatmul.mubr.msk.bf16.vlgmr.msra.gmra.mrb[0].mxu0 %vm617_vm4, %v749_v38  ;;  %v600_v57 = vrot.slane %v598_v53, 1  ;;  %v922_v61 = vrot.slane %v920_v45, 4  ;;  %v927_v62 = vrot.slane %v925_v46, 3  ;;  %v930_v63 = vrot.slane %v928_v47, 4  ;;  %v2176_v38 = vld [vmem:[#allocation4 + $0x70] sm:$0xff]   ;;  %v2179_v44 = vld [vmem:[#allocation4 + $0x78] sm:$0xff]  }
  0x5a   : > { %1972 = vmatpush3.bf16.msra.mxu0 %v2515_v10  ;;  %1975 = vmatprep.mubr.msk.bf16.mxu0 %vm617_vm4, %v836_v50  ;;  %v596_v0 = vor.u32 %v595_v54, %v591_v51  ;;  %v1363_v10 = vunpack.c.l.bf16 %v1360_v5  ;;  %v1829_v26 = vcombine.low %v1078_v19, %v1079_v20  ;;  %v1830_v27 = vcombine.low %v1080_v21, %v1081_v22  ;;  %v1266_v46 = vld [vmem:[#allocation2 + $0x4] sm:$0x8]  ;;  %v2180_v47 = vld [vmem:[#allocation4 + $0x80] sm:$0xff]   ;;  %v2181_v51 = vld [vmem:[#allocation4 + $0x88] sm:$0xff]  }
  0x5b   : > { %1973 = vmatprep.subr.bf16.mxu0 %v2158_v49  ;;  %v604_v1 = vor.u32 %v602_v55, %v600_v57  ;;  %v923_v8 = vor.u32 %v922_v61, %v919_v56  ;;  %v931_v9 = vor.u32 %v930_v63, %v927_v62  ;;  %v1835_v24 = vcombine.low %v1080_v21, %v1170_v28  ;;  %v2183_v53 = vld [vmem:[%s2721_s8] sm:$0xff]   ;;  %v2184_v54 = vld [vmem:[%s2721_s8 + $0x8] sm:$0xff]   ;;  %v2185_v55 = vld [vmem:[%s2721_s8 + $0x10] sm:$0xff]  }
  0x5c   : > { %v601_v4 = vsel %vm589_vm5, %v596_v0, %v600_v57  ;;  %v1367_v12 = vmul.f32 %v1364_v59, %v1363_v10  ;;  %v1098_v29 = vrot.slane %v1829_v26, 2  ;;  %v1099_v30 = vrot.slane %v1830_v27, 2  ;;  %v2186_v56 = vld [vmem:[%s2721_s8 + $0x18] sm:$0xff]   ;;  %v2187_v57 = vld [vmem:[%s2721_s8 + $0x20] sm:$0xff]   ;;  %v2189_v59 = vld [vmem:[%s2721_s8 + $0x30] sm:$0xff]  }
  0x5d   : > { %1951 = vmatprep.mubr.msk.bf16.mxu1 %vm617_vm4, %v601_v4  ;;  %v932_v14 = vsel %vm915_vm6, %v923_v8, %v931_v9  ;;  %v1824_v25 = vcombine.low %v2531_v35, %v2531_v35  ;;  %v1181_v31 = vshrl.u32 %v1829_v26, 16  ;;  %v1184_v34 = vshll.u32 %v1829_v26, 16  ;;  %v1850_v27 = vld [vmem:[%s512_s27] ss:$0 sm:$0xff]  ;;  %s2223_s27 = sshll.u32 %s2339_s17, 4  ;;  %s2224_s27 = int_to_ptr.vmem [resolvable:$false] %s2223_s27 }
  0x5e   : > { %1974 = vmatpush3.bf16.msra.mxu0 %v2158_v49  ;;  %1952 = vmatmul.mubr.msk.bf16.vlgmr.msra.gmra.mrb[0].mxu1 %vm617_vm4, %v604_v1  ;;  %v1100_v33 = vsel %vm1097_vm7, %v1098_v29, %v1099_v30  ;;  %v1189_v36 = vshrl.u32 %v1835_v24, 16  ;;  %v1192_v37 = vshll.u32 %v1835_v24, 16  ;;  %v1840_v48 = vcombine.low %v1266_v46, %v1079_v20  ;;  %p2226_p1 = scmp.lt.s32.totalorder %s2621_s14, %s2224_s27 }
  0x5f   : > { %1979 = vmatprep.subr.bf16.mxu0 %v2161_v60  ;;  %1956 = vmatpush3.bf16.msra.mxu1 %v2521_v23  ;;  %v2167_v23 = vld [vmem:[#allocation4 + $0x60] sm:$0xff]   ;;  %v1183_v39 = vrot.slane %v1181_v31, 2  ;;  %v1276_v50 = vrot.slane %v1835_v24, 3 }
  0x60   : > { %1959 = vmatprep.mubr.msk.bf16.mxu1 %vm617_vm4, %v1796_v40  ;;  %1957 = vmatprep.subr.bf16.mxu1 %v2178_v2  ;;  %v1186_v40 = vrot.slane %v1184_v34, 3  ;;  %v1191_v41 = vrot.slane %v1189_v36, 2  ;;  %v1194_v42 = vrot.slane %v1192_v37, 3  ;;  %v1275_v49 = vrot.slane %v1840_v48, 3 }
  0x61   : > { %1380 = vperm.xlu1 %2152, %v1367_v12  }
  0x62   : > { %v1187_v35 = vor.u32 %v1186_v40, %v1183_v39  ;;  %v1277_v52 = vsel %vm833_vm3, %v1275_v49, %v1276_v50 }
  0x63   : > { %1958 = vmatpush3.bf16.msra.mxu1 %v2178_v2  ;;  %v1845_v2 = vld [vmem:[%s499_s25] ss:$0 sm:$0xff] }
  0x64   : > { %2019 = vmatprep.subr.bf16.mxu1 %v2183_v53 }
  0x65   : > { %1976 = vmatmul.mubr.msk.bf16.vlgmr.msra.gmra.mrb[0].mxu0 %vm617_vm4, %v835_v43  ;;  %v1195_v43 = vor.u32 %v1194_v42, %v1191_v41 }
  0x66   : > { %1980 = vmatpush3.bf16.msra.mxu0 %v2161_v60  ;;  %1983 = vmatprep.mubr.msk.bf16.mxu0 %vm617_vm4, %v932_v14  ;;  %v2190_v60 = vld [vmem:[%s2721_s8 + $0x38] sm:$0xff]  }
  0x67   : > { %1981 = vmatprep.subr.bf16.mxu0 %v2162_v13  ;;  %v1196_v45 = vsel %vm1179_vm8, %v1187_v35, %v1195_v43 }
  0x6a   : > { %1982 = vmatpush3.bf16.msra.mxu0 %v2162_v13  ;;  %1960 = vmatmul.mubr.msk.bf16.vlgmr.msra.gmra.mrb[0].mxu1 %vm617_vm4, %v1802_v16  ;;  %v1846_v13 = vld [vmem:[%s2719_s6] ss:$0 sm:$0xff] }
  0x6b   : > { %1987 = vmatprep.subr.bf16.mxu0 %v2164_v15  ;;  %2020 = vmatpush3.bf16.msra.mxu1 %v2183_v53 }
  0x6c   : > { %2021 = vmatprep.subr.bf16.mxu1 %v2184_v54 }
  0x6f   : > { %2022 = vmatpush3.bf16.msra.mxu1 %v2184_v54 }
  0x70   : > { %2023 = vmatprep.subr.bf16.mxu1 %v2185_v55 }
  0x71   : > { %1984 = vmatmul.mubr.msk.bf16.vlgmr.msra.gmra.mrb[0].mxu0 %vm617_vm4, %v931_v9 }
  0x72   : > { %1988 = vmatpush3.bf16.msra.mxu0 %v2164_v15  ;;  %1991 = vmatprep.mubr.msk.bf16.mxu0 %vm617_vm4, %v1823_v17 }
  0x73   : > { %1989 = vmatprep.subr.bf16.mxu0 %v2165_v18  ;;  %2024 = vmatpush3.bf16.msra.mxu1 %v2185_v55 }
  0x74   : > { %2025 = vmatprep.subr.bf16.mxu1 %v2186_v56 }
  0x76   : > { %1990 = vmatpush3.bf16.msra.mxu0 %v2165_v18 }
  0x77   : > { %1995 = vmatprep.subr.bf16.mxu0 %v2167_v23  ;;  %2026 = vmatpush3.bf16.msra.mxu1 %v2186_v56 }
  0x78   : > { %2027 = vmatprep.subr.bf16.mxu1 %v2187_v57 }
  0x7b   : > { %2028 = vmatpush3.bf16.msra.mxu1 %v2187_v57 }
  0x7c   : > { %2029 = vmatprep.subr.bf16.mxu1 %v2188_v58 }
  0x7d   : > { %1992 = vmatmul.mubr.msk.bf16.vlgmr.msra.gmra.mrb[0].mxu0 %vm617_vm4, %v1824_v25 }
  0x7e   : > { %1996 = vmatpush3.bf16.msra.mxu0 %v2167_v23  ;;  %1999 = vmatprep.mubr.msk.bf16.mxu0 %vm617_vm4, %v1100_v33 }
  0x7f   : > { %1997 = vmatprep.subr.bf16.mxu0 %v2171_v32  ;;  %2030 = vmatpush3.bf16.msra.mxu1 %v2188_v58 }
  0x80   : > { %2031 = vmatprep.subr.bf16.mxu1 %v2189_v59 }
  0x82   : > { %1998 = vmatpush3.bf16.msra.mxu0 %v2171_v32 }
  0x83   : > { %2003 = vmatprep.subr.bf16.mxu0 %v2176_v38  ;;  %2032 = vmatpush3.bf16.msra.mxu1 %v2189_v59 }
  0x84   : > { %2033 = vmatprep.subr.bf16.mxu1 %v2190_v60 }
  0x87   : > { %2034 = vmatpush3.bf16.msra.mxu1 %v2190_v60 }
  0x89   : > { %2000 = vmatmul.mubr.msk.bf16.vlgmr.msra.gmra.mrb[0].mxu0 %vm617_vm4, %v1099_v30 }
  0x8a   : > { %2004 = vmatpush3.bf16.msra.mxu0 %v2176_v38  ;;  %2007 = vmatprep.mubr.msk.bf16.mxu0 %vm617_vm4, %v1196_v45 }
  0x8b   : > { %2005 = vmatprep.subr.bf16.mxu0 %v2179_v44 }
  0x8e   : > { %2006 = vmatpush3.bf16.msra.mxu0 %v2179_v44 }
  0x8f   : > { %2011 = vmatprep.subr.bf16.mxu0 %v2180_v47 }
  0x95   : > { %2008 = vmatmul.mubr.msk.bf16.vlgmr.msra.gmra.mrb[0].mxu0 %vm617_vm4, %v1195_v43 }
  0x96   : > { %2012 = vmatpush3.bf16.msra.mxu0 %v2180_v47  ;;  %2015 = vmatprep.mubr.msk.bf16.mxu0 %vm617_vm4, %v1277_v52 }
  0x97   : > { %2013 = vmatprep.subr.bf16.mxu0 %v2181_v51 }
  0x9a   : > { %2014 = vmatpush3.bf16.msra.mxu0 %v2181_v51 }
  0xa1   : > { %2016 = vmatmul.mubr.msk.bf16.vlgmr.msra.gmra.mrb[0].mxu0 %vm617_vm4, %v1276_v50 }
  0xc8   : > { %v1371_v3 = vpop.permute.xlu0 %1370 }
  0xcc   : > { %v1376_v17 = vpop.permute.xlu0 %1375 }
  0xe0   : > { %v1381_v8 = vpop.permute.xlu1 %1380 }
 0x13d   : > { %v1961_v61 = vpop.f32.mrb[0].mxu1 }
 0x13e   : > { %v724_v62 = vpop.f32.mrb[1].mxu1 }
 0x13f   : > { %v1962_v63 = vpop.f32.mrb[2].mxu1 }
 0x140   : > { %v727_v0 = vpop.f32.mrb[3].mxu1 }
 0x174   : > { %v2017_v1 = vpop.f32.mrb[0].mxu0 }
 0x175   : > { %v2039_v4 = vadd.f32 %v2017_v1, %v1961_v61  ;;  %v1330_v5 = vpop.f32.mrb[1].mxu0 }
 0x176   : > { %v2040_v6 = vadd.f32 %v1330_v5, %v724_v62  ;;  %v2018_v7 = vpop.f32.mrb[2].mxu0 }
 0x177   : > { %v1333_v9 = vpop.f32.mrb[3].mxu0  ;;  %v1356_v10 = vmul.f32 %v2039_v4, %v1845_v2 }
 0x178   : > { %v1354_v11 = vmul.f32 %v2040_v6, %v1845_v2  ;;  %v2041_v12 = vadd.f32 %v1333_v9, %v727_v0 }
 0x179   : > { %v1385_v14 = vadd.f32 %v1381_v8, %v1356_v10 }
 0x17a   : > { %v1383_v15 = vadd.f32 %v1371_v3, %v1354_v11  ;;  %v1355_v16 = vmul.f32 %v2041_v12, %v1845_v2 }
 0x17b   : > { %v1395_v18 = vadd.f32 %v1846_v13, %v1385_v14 }
 0x17c   : > { %v1384_v19 = vadd.f32 %v1376_v17, %v1355_v16  ;;  %v1393_v20 = vadd.f32 %v1846_v13, %v1383_v15 }
 0x17d   : > { %vm1398_vm9 = vcmp.ge.f32.partialorder %v1395_v18, 0.0  ;;  %v1401_v21 = vmul.f32 0.2, %v1395_v18 }
 0x17e   : > { %v1394_v22 = vadd.f32 %v1846_v13, %v1384_v19  ;;  %vm1396_vm10 = vcmp.ge.f32.partialorder %v1393_v20, 0.0  ;;  %v1399_v23 = vmul.f32 0.2, %v1393_v20 }
 0x17f   : > { %v1404_v26 = vsel %vm1398_vm9, %v1395_v18, %v1401_v21 }
 0x180   : > { %v1874_v28 = vpack.c.bf16 %v1404_v26, %v1404_v26  ;;  %vm1397_vm11 = vcmp.ge.f32.partialorder %v1394_v22, 0.0  ;;  %v1400_v29 = vmul.f32 0.2, %v1394_v22  ;;  %v1402_v30 = vsel %vm1396_vm10, %v1393_v20, %v1399_v23 }
 0x181   : > { %v1430_v25 = vmul.f32 %v1850_v27, %v1404_v26  ;;  %v1428_v32 = vmul.f32 %v1850_v27, %v1402_v30 }
 0x182   : > { %1420 = vst [vmem:[%s479_s15 + $0x8] sm:$0xf] %v1874_v28  ;;  %v1403_v24 = vsel %vm1397_vm11, %v1394_v22, %v1400_v29 }
 0x183   : > { %v1893_v31 = vpack.c.bf16 %v1403_v24, %v1402_v30  ;;  %v1429_v33 = vmul.f32 %v1850_v27, %v1403_v24  ;;  %v1432_v36 = vpack.c.bf16 %v1430_v25, %v1430_v25 }
 0x185   : > { %1894 = vst [vmem:[%s479_s15] sm:$0xff] %v1893_v31   ;;  %v1431_v34 = vpack.c.bf16 %v1429_v33, %v1428_v32  ;;  %s2225_s15 = scalar_lea.vmem %s2224_s27, 384 }
 0x186   : > { %p2227_p3 = scmp.lt.s32.totalorder %s2225_s15, %s2219_s13 }
 0x187   : > { %2035 = vmatprep.mubr.bf16.mxu1 %v1431_v34 }
 0x188   : > { %2036 = vmatmul.mubr.bf16.vlgmr.msra.gmra.mrb[4].mxu1 %v1432_v36  ;;  %p2228_p5 = por %p2227_p3, %p2226_p1 }
 0x18a   : > { %p2229_p6 = pnand %p2228_p5, %p2222_p13 }
 0x18c   : > { %2232 = shalt.err (!%p2229_p6)
}
 0x18d   : > { %s2233_s18 = scalar_lea.hbm %s2619_s29, 192  ;;  %s2237_s17 = scalar_lea.hbm %s2723_s10, 384 }
 0x18e   : > { %p2234_p7 = scmp.ne.s32.totalorder %s2619_s29, %s2233_s18  ;;  %p2238_p0 = scmp.lt.u32.totalorder %s2619_s29, %s2723_s10 }
 0x18f   : > { %p2239_p2 = scmp.lt.u32.totalorder %s2237_s17, %s2233_s18  ;;  %p2241_p8 = scmp.lt.u32.totalorder %s2233_s18, %s2619_s29 }
 0x190   : > { %p2235_p9 = pnand %p2234_p7, %p2744_p10 }
 0x191   : > { %p2240_p4 = por %p2239_p2, %p2238_p0 }
 0x192   : > { %p2236_p12 = pneg %p2235_p9 }
 0x193   : > { %p2242_p11 = por %p2241_p8, %p2240_p4 }
 0x195   : > { %p2243_p13 = pnand %p2242_p11, %p2236_p12 }
 0x197   : > { %2246 = shalt.err (!%p2243_p13)
}
 0x198   : > { %s2733_s13 = smov 64   ;;  %s2734_s15 = smov 4   ;;  %v1851_v37 = vld [vmem:[%s2722_s9] ss:$0 sm:$0xff] }
 0x199   : > { %2079 = dma.vmem_to_hbm [thread:$0]  (%p2744_p10), %s2621_s14, 192, %s2619_s29, %s1578_s26, %s2733_s13, %s2733_s13, %s2734_s15  }
 0x19a   : > { %s2745_s18 = smul.u32 12, %s2601_s5  ;;  %s1583_s16 = scalar_lea.sflag [#allocation9], %s2601_s5 }
 0x19b   : > { %s2746_s29 = smul.u32 192, %s2325_s22 }
 0x19c   : > { %s486_s25 = scalar_lea.vmem [#allocation8], %s2745_s18  ;;  %s2342_s18 = smov [#allocation8]  }
 0x19d   : > { %s1616_s14 = sshll.u32 %s486_s25, 4  ;;  %s2662_s27 = scalar_lea.hbm %s2724_s11, %s2746_s29  ;;  %s2655_s14 = int_to_ptr.vmem [resolvable:$true] %s1616_s14 }
 0x19e   : > { %s2247_s23 = scalar_lea.vmem %s2655_s14, 192  ;;  %s2251_s13 = sshll.u32 %s2342_s18, 4  ;;  %s2252_s13 = int_to_ptr.vmem [resolvable:$false] %s2251_s13 }
 0x19f   : > { %p2248_p1 = scmp.ne.s32.totalorder %s2655_s14, %s2247_s23  ;;  %s2253_s15 = scalar_lea.vmem %s2252_s13, 384 }
 0x1a0   : > { %p2254_p6 = scmp.lt.s32.totalorder %s2655_s14, %s2252_s13  ;;  %p2255_p7 = scmp.lt.s32.totalorder %s2253_s15, %s2247_s23 }
 0x1a1   : > { %p2249_p3 = pnand %p2248_p1, %p2744_p10 }
 0x1a2   : > { %p2256_p9 = por %p2255_p7, %p2254_p6 }
 0x1a3   : > { %p2250_p5 = pneg %p2249_p3 }
 0x1a5   : > { %p2257_p12 = pnand %p2256_p9, %p2250_p5 }
 0x25b   : > { %v2037_v38 = vpop.f32.mrb[4].mxu1 }
 0x25c   : > { %v1547_v39 = vadd.f32 %v2037_v38, %v1851_v37  ;;  %v1538_v40 = vpop.f32.mrb[5].mxu1 }
 0x25d   : > { %v1539_v41 = vadd.f32 %v1851_v37, %v1538_v40  ;;  %v2038_v42 = vpop.f32.mrb[6].mxu1 }
 0x25e   : > { %vm1554_vm12 = vcmp.ge.f32.partialorder %v1547_v39, 0.0  ;;  %v1557_v35 = vmul.f32 0.2, %v1547_v39  ;;  %v1541_v43 = vpop.f32.mrb[7].mxu1 }
 0x25f   : > { %v1555_v44 = vmul.f32 0.2, %v1539_v41  ;;  %v1542_v45 = vadd.f32 %v1851_v37, %v1541_v43  ;;  %vm1552_vm13 = vcmp.ge.f32.partialorder %v1539_v41, 0.0 }
 0x260   : > { %v1560_v46 = vsel %vm1554_vm12, %v1547_v39, %v1557_v35 }
 0x261   : > { %v1877_v47 = vpack.c.bf16 %v1560_v46, %v1560_v46  ;;  %vm1553_vm14 = vcmp.ge.f32.partialorder %v1542_v45, 0.0  ;;  %v1556_v48 = vmul.f32 0.2, %v1542_v45  ;;  %v1558_v49 = vsel %vm1552_vm13, %v1539_v41, %v1555_v44 }
 0x263   : > { %1576 = vst [vmem:[%s486_s25 + $0x8] sm:$0xf] %v1877_v47  ;;  %v1559_v50 = vsel %vm1553_vm14, %v1542_v45, %v1556_v48 }
 0x264   : > { %v1898_v51 = vpack.c.bf16 %v1559_v50, %v1558_v49 }
 0x266   : > { %1899 = vst [vmem:[%s486_s25] sm:$0xff] %v1898_v51  }
 0x267   : > { %2260 = shalt.err (!%p2257_p12)
}
 0x268   : > { %s2261_s22 = scalar_lea.hbm %s2662_s27, 192  ;;  %s2265_s26 = scalar_lea.hbm %s2724_s11, 384 }
 0x269   : > { %p2262_p0 = scmp.ne.s32.totalorder %s2662_s27, %s2261_s22  ;;  %p2266_p8 = scmp.lt.u32.totalorder %s2662_s27, %s2724_s11 }
 0x26a   : > { %p2267_p11 = scmp.lt.u32.totalorder %s2265_s26, %s2261_s22  ;;  %p2269_p1 = scmp.lt.u32.totalorder %s2261_s22, %s2662_s27 }
 0x26b   : > { %p2263_p2 = pnand %p2262_p0, %p2744_p10 }
 0x26c   : > { %p2268_p13 = por %p2267_p11, %p2266_p8 }
 0x26d   : > { %p2264_p4 = pneg %p2263_p2 }
 0x26e   : > { %p2270_p3 = por %p2269_p1, %p2268_p13 }
 0x270   : > { %p2271_p5 = pnand %p2270_p3, %p2264_p4 }
 0x272   : > { %2274 = shalt.err (!%p2271_p5)
}
 0x273   : > { %s2747_s15 = smov 4   ;;  %s2748_s23 = smov 64  }
 0x274   : > { %2080 = dma.vmem_to_hbm [thread:$0]  (%p2744_p10), %s2655_s14, 192, %s2662_s27, %s1583_s16, %s2748_s23, %s2748_s23, %s2747_s15  }
 0x275 PF: > { %p2096_p6 = scmp.ge.s32.totalorder %s2333_s24, 2  ;;  %s1631_s18 = sand.u32 1, %s2313_s19  }
 0x276   : > { %p2749_p7 = scmp.ne.s32.totalorder %s2738_s30, 0  ;;  %s1632_s22 = scalar_lea.sflag [#allocation6], %s1631_s18 }
 0x278   : > { %p2088_p9 = pnand %p2096_p6, %p2749_p7 }
 0x27a   : > { %2304 = dma.done.wait (!%p2088_p9), %s1632_s22, 192  }
 0x27b   : > { %2306 = vsyncadd (!%p2088_p9), %s1632_s22, 4294967104  ;;  %s1641_s28 = scalar_lea.sflag [#allocation9], %s1631_s18 }
 0x27c   : > { %2308 = dma.done.wait (!%p2088_p9), %s1641_s28, 192  }
 0x27d   : > { %2310 = vsyncadd (!%p2088_p9), %s1641_s28, 4294967104  ;;  %s30_s24 = sadd.s32 1, %s2333_s24   ;;  %s2750_s22 = sld [smem:[#allocation13_spill]] }
 0x27e   : > { %p27_p12 = scmp.ge.s32.totalorder %s30_s24, 4   ;;  %s2751_s23 = sld [smem:[#allocation14_spill]] }
 0x27f   : > { %s2752_s19 = smov %s2317_s20  ;;  %s2753_s20 = smov %s2321_s21 }
 0x280   : > { %s2754_s21 = smov %s2459_s12  ;;  %29 = sbr.rel (!%p27_p12) target bundleno = 9 (0x9), region = 137 }
 0x287   :  { %1646 = vsyncpa [#allocation5], 1 }
 0x288   :  { %1648 = vsyncpa [#allocation5 + $0x1], 1 }
 0x289   :  { %1649 = vsyncpa [#allocation6], 1 }
 0x28a   :  { %1651 = vsyncpa [#allocation6 + $0x1], 1 }
 0x28b   :  { %1652 = vsyncpa [#allocation9], 1 }
 0x28c   :  { %1654 = vsyncpa [#allocation9 + $0x1], 1 }

</bundles_post_ra>
